<compile_context>
chip_gen: v7x
topology: tpu7x:2x2x1
jax: 0.10.0
libtpu: 0.0.40
codegen_flags: <defaults>
</compile_context>

<pallas_src>
import functools

import jax
import jax.numpy as jnp
import numpy as np
from jax.experimental import pallas as pl
from jax.experimental.pallas import tpu as pltpu


# Minimax polynomial coefficients (Sleef atanf-style) for atan on [0, 1].
_ATAN_COEFFS = (
    0.00282363896258175373077393,
    -0.0159569028764963150024414,
    0.0425049886107444763183594,
    -0.0748900920152664184570312,
    0.106347933411598205566406,
    -0.142027363181114196777344,
    0.199926957488059997558594,
    -0.333331018686294555664062,
)


def _abs_atan2(y, x):
    """|atan2(y, x)| in [0, pi], built only from VPU/EUP ops.

    Sign handling of y is dropped because only the absolute angle is needed.
    """
    abs_y = jnp.abs(y)
    abs_x = jnp.abs(x)
    num = jnp.minimum(abs_y, abs_x)
    den = jnp.maximum(abs_y, abs_x)
    # EUP approximate reciprocal instead of a VALU Newton-expanded divide.
    a = num * pl.reciprocal(jnp.maximum(den, jnp.float32(1e-30)), approx=True)
    s = a * a
    u = jnp.full_like(a, jnp.float32(_ATAN_COEFFS[0]))
    for c in _ATAN_COEFFS[1:]:
        u = u * s + jnp.float32(c)
    r = a + a * s * u                                   # atan(a), a in [0, 1]
    r = jnp.where(abs_y > abs_x, jnp.float32(np.pi / 2) - r, r)
    r = jnp.where(x < 0, jnp.float32(np.pi) - r, r)
    return r


def _sum_all(x):
    """Full reduction kept in the vector path as a (1, 1) tile."""
    return jnp.sum(jnp.sum(x, axis=1, keepdims=True), axis=0, keepdims=True)


def _freq_loss_kernel(ro_ref, io_ref, rt_ref, it_ref, fw_ref, loss_ref,
                      mse_acc, wmag_acc, psum_acc, cnt_acc, *,
                      alpha, beta, gamma, inv_mse_count, inv_wmag_count):
    @pl.when(pl.program_id(0) == 0)
    def _init():
        mse_acc[...] = jnp.zeros_like(mse_acc)
        wmag_acc[...] = jnp.zeros_like(wmag_acc)
        psum_acc[...] = jnp.zeros_like(psum_acc)
        cnt_acc[...] = jnp.zeros_like(cnt_acc)

    ro = ro_ref[...].astype(jnp.float32)     # (TB, D)
    io = io_ref[...].astype(jnp.float32)
    rt = rt_ref[...].astype(jnp.float32)
    it = it_ref[...].astype(jnp.float32)
    fw = fw_ref[...]                         # (1, D) float32

    # --- MSE over real+imag (sum here; divided by the true count in finalize) ---
    dr = ro - rt
    di = io - it
    mse_acc[...] += _sum_all(dr * dr + di * di)

    # --- frequency-weighted magnitude loss ---
    omag = jnp.sqrt(ro * ro + io * io)
    tmag = jnp.sqrt(rt * rt + it * it)
    md = omag - tmag
    wmag_acc[...] += _sum_all(md * md * fw)

    # --- significant bins: > 5% of the per-row max target magnitude ---
    # (the block holds full rows, so the row max is exact)
    tmax = jnp.max(tmag, axis=1, keepdims=True)
    sig = tmag > 0.05 * tmax

    # --- wrapped phase difference, fused into ONE atan2:
    #     min(|phi_o - phi_t|, 2pi - |phi_o - phi_t|) == |angle(o * conj(t))|
    cross = io * rt - ro * it
    dotp = ro * rt + io * it
    pd = _abs_atan2(cross, dotp)
    pd2 = pd * pd

    psum_acc[...] += _sum_all(jnp.where(sig, pd2, jnp.float32(0.0)))
    cnt_acc[...] += _sum_all(sig.astype(jnp.float32))

    @pl.when(pl.program_id(0) == pl.num_programs(0) - 1)
    def _finalize():
        mse = mse_acc[...] * jnp.float32(inv_mse_count)
        wmag = wmag_acc[...] * jnp.float32(inv_wmag_count)
        cnt = cnt_acc[...]
        phase = jnp.where(cnt > 0.0,
                          psum_acc[...] / jnp.maximum(cnt, 1.0),
                          jnp.zeros_like(cnt))
        loss_ref[...] = (jnp.float32(alpha) * mse
                         + jnp.float32(beta) * wmag
                         + jnp.float32(gamma) * phase)


def custom_frequency_loss(output, target, freq_weights, *,
                          alpha=0.7, beta=1.0, gamma=1.3, batch_tile=256):
    """Pallas TPU implementation of CustomFrequencyLoss.forward.

    output/target: (B, 2*D) with real part in [:, :D], imag in [:, D:].
    batch_tile: rows per grid step; keep it a multiple of 16 (bf16-safe).
    """
    assert output.shape == target.shape and output.ndim == 2
    b, two_d = output.shape
    dft_size = two_d // 2
    assert two_d == 2 * dft_size
    assert freq_weights.shape[-1] == dft_size
    fw = jnp.asarray(freq_weights, jnp.float32).reshape(1, dft_size)

    # Wrapper-side real/imag split -> four lane-dense (B, D) operands.
    ro, io = output[:, :dft_size], output[:, dft_size:]
    rt, it = target[:, :dft_size], target[:, dft_size:]

    if b <= batch_tile:
        tb, b_pad = b, b                       # single tile, block = full array
    else:
        tb = batch_tile
        b_pad = ((b + tb - 1) // tb) * tb
        if b_pad != b:
            # Zero rows contribute nothing to any term (diff = 0, mag_diff = 0,
            # sig = False); the means below use the TRUE counts.
            pad = ((0, b_pad - b), (0, 0))
            ro, io = jnp.pad(ro, pad), jnp.pad(io, pad)
            rt, it = jnp.pad(rt, pad), jnp.pad(it, pad)
    num_tiles = b_pad // tb

    kernel = functools.partial(
        _freq_loss_kernel,
        alpha=float(alpha), beta=float(beta), gamma=float(gamma),
        inv_mse_count=1.0 / float(b * 2 * dft_size),
        inv_wmag_count=1.0 / float(b * dft_size),
    )

    row_spec = pl.BlockSpec((tb, dft_size), lambda i: (i, 0))
    loss = pl.pallas_call(
        kernel,
        out_shape=jax.ShapeDtypeStruct((1, 1), jnp.float32),
        grid_spec=pltpu.PrefetchScalarGridSpec(
            num_scalar_prefetch=0,
            grid=(num_tiles,),
            in_specs=[row_spec, row_spec, row_spec, row_spec,
                      pl.BlockSpec((1, dft_size), lambda i: (0, 0))],
            out_specs=pl.BlockSpec((1, 1), lambda i: (0, 0)),
            scratch_shapes=[pltpu.VMEM((1, 1), jnp.float32)] * 4,
        ),
        compiler_params=pltpu.CompilerParams(
            dimension_semantics=("arbitrary",)),   # sequential: safe accumulation
    )(ro, io, rt, it, fw)
    return loss[0, 0]


def _reference_loss(output, target, freq_weights, alpha=0.7, beta=1.0, gamma=1.3):
    """Pure-JAX reference mirroring the PyTorch forward (uses jnp.arctan2)."""
    D = freq_weights.shape[0]
    ro, io = output[:, :D], output[:, D:]
    rt, it = target[:, :D], target[:, D:]
    mse = jnp.mean((output - target) ** 2)
    omag = jnp.sqrt(ro ** 2 + io ** 2)
    tmag = jnp.sqrt(rt ** 2 + it ** 2)
    wmag = jnp.mean(((omag - tmag) ** 2) * freq_weights[None, :])
    sig = tmag > 0.05 * jnp.max(tmag, axis=1, keepdims=True)
    pd = jnp.abs(jnp.arctan2(io, ro) - jnp.arctan2(it, rt))
    pd = jnp.minimum(pd, 2.0 * jnp.pi - pd)
    cnt = jnp.sum(sig)
    ploss = jnp.where(
        cnt > 0,
        jnp.sum(jnp.where(sig, pd ** 2, 0.0)) / jnp.maximum(cnt, 1),
        0.0,
    )
    return alpha * mse + beta * wmag + gamma * ploss


if __name__ == "__main__":
    def run_case(batch, dft_size, batch_tile):
        key = jax.random.PRNGKey(0)
        k1, k2 = jax.random.split(key)
        output = jax.random.normal(k1, (batch, 2 * dft_size), dtype=jnp.float32)
        target = jax.random.normal(k2, (batch, 2 * dft_size), dtype=jnp.float32)
        # Same buffer formula as the PyTorch __init__:
        # freq_weights[i] = 1.0 + 0.5 * (1.0 - i / dft_size)
        idx = jnp.arange(dft_size, dtype=jnp.float32)
        freq_weights = 1.0 + 0.5 * (1.0 - idx / dft_size)

        loss = custom_frequency_loss(output, target, freq_weights,
                                     batch_tile=batch_tile)
        loss = jax.block_until_ready(loss)
        ref = _reference_loss(output, target, freq_weights)
        assert np.allclose(np.asarray(loss), np.asarray(ref),
                           rtol=1e-3, atol=1e-3), (batch, dft_size,
                                                   float(loss), float(ref))

    # Single-tile path (block == full array) at small module-consistent shapes.
    run_case(batch=4, dft_size=128, batch_tile=256)
    # Multi-tile path: grid of 3 batch tiles + zero-padded remainder rows.
    run_case(batch=20, dft_size=128, batch_tile=8)
    print("KERNEL_OK")
</pallas_src>

<mosaic_0001>
module attributes {stable_mosaic.version = 11 : i64} {
  func.func @_freq_loss_kernel(%arg0: i32, %arg1: memref<4x128xf32, #tpu.memory_space<vmem>>, %arg2: memref<4x128xf32, #tpu.memory_space<vmem>>, %arg3: memref<4x128xf32, #tpu.memory_space<vmem>>, %arg4: memref<4x128xf32, #tpu.memory_space<vmem>>, %arg5: memref<1x128xf32, #tpu.memory_space<vmem>>, %arg6: memref<1x1xf32, #tpu.memory_space<vmem>>, %arg7: memref<1x1xf32, #tpu.memory_space<vmem>>, %arg8: memref<1x1xf32, #tpu.memory_space<vmem>>, %arg9: memref<1x1xf32, #tpu.memory_space<vmem>>, %arg10: memref<1x1xf32, #tpu.memory_space<vmem>>) attributes {dimension_semantics = [#tpu.dimension_semantics<arbitrary>], iteration_bounds = array<i64: 1>, scalar_prefetch = 0 : i64, scratch_operands = 4 : i64, tpu.core_type = #tpu.core_type<tc>, window_params = [{transform_indices = @transform_0, window_bounds = array<i64: 4, 128>}, {transform_indices = @transform_1, window_bounds = array<i64: 4, 128>}, {transform_indices = @transform_2, window_bounds = array<i64: 4, 128>}, {transform_indices = @transform_3, window_bounds = array<i64: 4, 128>}, {pipeline_mode = #tpu.pipeline_mode<synchronous>, transform_indices = @transform_4, window_bounds = array<i64: 1, 128>}, {pipeline_mode = #tpu.pipeline_mode<synchronous>, transform_indices = @transform_5, window_bounds = array<i64: 1, 1>}]} {
    %c0_i32 = arith.constant 0 : i32
    %0 = arith.cmpi eq, %arg0, %c0_i32 : i32
    %1 = arith.extui %0 : i1 to i32
    %c0_i32_0 = arith.constant 0 : i32
    %2 = arith.cmpi ne, %1, %c0_i32_0 : i32
    scf.if %2 {
      %cst_50 = arith.constant 0.000000e+00 : f32
      %116 = vector.broadcast %cst_50 : f32 to vector<1x1xf32>
      %c0_51 = arith.constant 0 : index
      %c0_52 = arith.constant 0 : index
      %117 = vector.load %arg7[%c0_51, %c0_52] : memref<1x1xf32, #tpu.memory_space<vmem>>, vector<1x1xf32>
      tpu.vector_store %arg7[%c0_51, %c0_52], %116 {strides = array<i32>} : memref<1x1xf32, #tpu.memory_space<vmem>>, vector<1x1xf32>,
      %cst_53 = arith.constant 0.000000e+00 : f32
      %118 = vector.broadcast %cst_53 : f32 to vector<1x1xf32>
      %c0_54 = arith.constant 0 : index
      %c0_55 = arith.constant 0 : index
      %119 = vector.load %arg8[%c0_54, %c0_55] : memref<1x1xf32, #tpu.memory_space<vmem>>, vector<1x1xf32>
      tpu.vector_store %arg8[%c0_54, %c0_55], %118 {strides = array<i32>} : memref<1x1xf32, #tpu.memory_space<vmem>>, vector<1x1xf32>,
      %cst_56 = arith.constant 0.000000e+00 : f32
      %120 = vector.broadcast %cst_56 : f32 to vector<1x1xf32>
      %c0_57 = arith.constant 0 : index
      %c0_58 = arith.constant 0 : index
      %121 = vector.load %arg9[%c0_57, %c0_58] : memref<1x1xf32, #tpu.memory_space<vmem>>, vector<1x1xf32>
      tpu.vector_store %arg9[%c0_57, %c0_58], %120 {strides = array<i32>} : memref<1x1xf32, #tpu.memory_space<vmem>>, vector<1x1xf32>,
      %cst_59 = arith.constant 0.000000e+00 : f32
      %122 = vector.broadcast %cst_59 : f32 to vector<1x1xf32>
      %c0_60 = arith.constant 0 : index
      %c0_61 = arith.constant 0 : index
      %123 = vector.load %arg10[%c0_60, %c0_61] : memref<1x1xf32, #tpu.memory_space<vmem>>, vector<1x1xf32>
      tpu.vector_store %arg10[%c0_60, %c0_61], %122 {strides = array<i32>} : memref<1x1xf32, #tpu.memory_space<vmem>>, vector<1x1xf32>,
    } else {
    }
    %c0 = arith.constant 0 : index
    %c0_1 = arith.constant 0 : index
    %3 = vector.load %arg1[%c0, %c0_1] : memref<4x128xf32, #tpu.memory_space<vmem>>, vector<4x128xf32>
    %c0_2 = arith.constant 0 : index
    %c0_3 = arith.constant 0 : index
    %4 = vector.load %arg2[%c0_2, %c0_3] : memref<4x128xf32, #tpu.memory_space<vmem>>, vector<4x128xf32>
    %c0_4 = arith.constant 0 : index
    %c0_5 = arith.constant 0 : index
    %5 = vector.load %arg3[%c0_4, %c0_5] : memref<4x128xf32, #tpu.memory_space<vmem>>, vector<4x128xf32>
    %c0_6 = arith.constant 0 : index
    %c0_7 = arith.constant 0 : index
    %6 = vector.load %arg4[%c0_6, %c0_7] : memref<4x128xf32, #tpu.memory_space<vmem>>, vector<4x128xf32>
    %c0_8 = arith.constant 0 : index
    %c0_9 = arith.constant 0 : index
    %7 = vector.load %arg5[%c0_8, %c0_9] : memref<1x128xf32, #tpu.memory_space<vmem>>, vector<1x128xf32>
    %8 = arith.subf %3, %5 : vector<4x128xf32>
    %9 = arith.subf %4, %6 : vector<4x128xf32>
    %c0_10 = arith.constant 0 : index
    %c0_11 = arith.constant 0 : index
    %10 = vector.load %arg7[%c0_10, %c0_11] : memref<1x1xf32, #tpu.memory_space<vmem>>, vector<1x1xf32>
    %11 = arith.mulf %8, %8 : vector<4x128xf32>
    %12 = arith.mulf %9, %9 : vector<4x128xf32>
    %13 = arith.addf %11, %12 : vector<4x128xf32>
    %cst = arith.constant dense<0.000000e+00> : vector<4xf32>
    %14 = vector.multi_reduction <add>, %13, %cst [1] : vector<4x128xf32> to vector<4xf32>
    %15 = vector.shape_cast %14 : vector<4xf32> to vector<4x1xf32>
    %cst_12 = arith.constant dense<0.000000e+00> : vector<1xf32>
    %16 = vector.multi_reduction <add>, %15, %cst_12 [0] : vector<4x1xf32> to vector<1xf32>
    %17 = vector.shape_cast %16 : vector<1xf32> to vector<1x1xf32>
    %18 = arith.addf %10, %17 : vector<1x1xf32>
    %c0_13 = arith.constant 0 : index
    %c0_14 = arith.constant 0 : index
    %19 = vector.load %arg7[%c0_13, %c0_14] : memref<1x1xf32, #tpu.memory_space<vmem>>, vector<1x1xf32>
    tpu.vector_store %arg7[%c0_13, %c0_14], %18 {strides = array<i32>} : memref<1x1xf32, #tpu.memory_space<vmem>>, vector<1x1xf32>,
    %20 = arith.mulf %3, %3 : vector<4x128xf32>
    %21 = arith.mulf %4, %4 : vector<4x128xf32>
    %22 = arith.addf %20, %21 : vector<4x128xf32>
    %23 = math.sqrt %22 : vector<4x128xf32>
    %24 = arith.mulf %5, %5 : vector<4x128xf32>
    %25 = arith.mulf %6, %6 : vector<4x128xf32>
    %26 = arith.addf %24, %25 : vector<4x128xf32>
    %27 = math.sqrt %26 : vector<4x128xf32>
    %28 = arith.subf %23, %27 : vector<4x128xf32>
    %c0_15 = arith.constant 0 : index
    %c0_16 = arith.constant 0 : index
    %29 = vector.load %arg8[%c0_15, %c0_16] : memref<1x1xf32, #tpu.memory_space<vmem>>, vector<1x1xf32>
    %30 = arith.mulf %28, %28 : vector<4x128xf32>
    %31 = vector.broadcast %7 : vector<1x128xf32> to vector<4x128xf32>
    %32 = arith.mulf %30, %31 : vector<4x128xf32>
    %cst_17 = arith.constant dense<0.000000e+00> : vector<4xf32>
    %33 = vector.multi_reduction <add>, %32, %cst_17 [1] : vector<4x128xf32> to vector<4xf32>
    %34 = vector.shape_cast %33 : vector<4xf32> to vector<4x1xf32>
    %cst_18 = arith.constant dense<0.000000e+00> : vector<1xf32>
    %35 = vector.multi_reduction <add>, %34, %cst_18 [0] : vector<4x1xf32> to vector<1xf32>
    %36 = vector.shape_cast %35 : vector<1xf32> to vector<1x1xf32>
    %37 = arith.addf %29, %36 : vector<1x1xf32>
    %c0_19 = arith.constant 0 : index
    %c0_20 = arith.constant 0 : index
    %38 = vector.load %arg8[%c0_19, %c0_20] : memref<1x1xf32, #tpu.memory_space<vmem>>, vector<1x1xf32>
    tpu.vector_store %arg8[%c0_19, %c0_20], %37 {strides = array<i32>} : memref<1x1xf32, #tpu.memory_space<vmem>>, vector<1x1xf32>,
    %cst_21 = arith.constant dense<0xFF800000> : vector<4xf32>
    %39 = vector.multi_reduction <maximumf>, %27, %cst_21 [1] : vector<4x128xf32> to vector<4xf32>
    %40 = vector.shape_cast %39 : vector<4xf32> to vector<4x1xf32>
    %cst_22 = arith.constant 5.000000e-02 : f32
    %41 = vector.broadcast %cst_22 : f32 to vector<4x1xf32>
    %42 = arith.mulf %41, %40 : vector<4x1xf32>
    %43 = vector.broadcast %42 : vector<4x1xf32> to vector<4x128xf32>
    %44 = arith.cmpf ogt, %27, %43 : vector<4x128xf32>
    %45 = arith.mulf %4, %5 : vector<4x128xf32>
    %46 = arith.mulf %3, %6 : vector<4x128xf32>
    %47 = arith.subf %45, %46 : vector<4x128xf32>
    %48 = arith.mulf %3, %5 : vector<4x128xf32>
    %49 = arith.mulf %4, %6 : vector<4x128xf32>
    %50 = arith.addf %48, %49 : vector<4x128xf32>
    %51 = math.absf %47 : vector<4x128xf32>
    %52 = math.absf %50 : vector<4x128xf32>
    %53 = arith.minimumf %51, %52 : vector<4x128xf32>
    %54 = arith.maximumf %51, %52 : vector<4x128xf32>
    %cst_23 = arith.constant 1.000000e-30 : f32
    %55 = vector.broadcast %cst_23 : f32 to vector<4x128xf32>
    %56 = arith.maximumf %54, %55 : vector<4x128xf32>
    %57 = tpu.reciprocal %56 {approx = true} : vector<4x128xf32> -> vector<4x128xf32>
    %58 = arith.mulf %53, %57 : vector<4x128xf32>
    %59 = arith.mulf %58, %58 : vector<4x128xf32>
    %cst_24 = arith.constant 0.00282363896 : f32
    %60 = vector.broadcast %cst_24 : f32 to vector<4x128xf32>
    %61 = arith.mulf %60, %59 : vector<4x128xf32>
    %cst_25 = arith.constant -0.0159569029 : f32
    %62 = vector.broadcast %cst_25 : f32 to vector<4x128xf32>
    %63 = arith.addf %61, %62 : vector<4x128xf32>
    %64 = arith.mulf %63, %59 : vector<4x128xf32>
    %cst_26 = arith.constant 0.0425049886 : f32
    %65 = vector.broadcast %cst_26 : f32 to vector<4x128xf32>
    %66 = arith.addf %64, %65 : vector<4x128xf32>
    %67 = arith.mulf %66, %59 : vector<4x128xf32>
    %cst_27 = arith.constant -0.074890092 : f32
    %68 = vector.broadcast %cst_27 : f32 to vector<4x128xf32>
    %69 = arith.addf %67, %68 : vector<4x128xf32>
    %70 = arith.mulf %69, %59 : vector<4x128xf32>
    %cst_28 = arith.constant 0.106347933 : f32
    %71 = vector.broadcast %cst_28 : f32 to vector<4x128xf32>
    %72 = arith.addf %70, %71 : vector<4x128xf32>
    %73 = arith.mulf %72, %59 : vector<4x128xf32>
    %cst_29 = arith.constant -0.142027363 : f32
    %74 = vector.broadcast %cst_29 : f32 to vector<4x128xf32>
    %75 = arith.addf %73, %74 : vector<4x128xf32>
    %76 = arith.mulf %75, %59 : vector<4x128xf32>
    %cst_30 = arith.constant 0.199926957 : f32
    %77 = vector.broadcast %cst_30 : f32 to vector<4x128xf32>
    %78 = arith.addf %76, %77 : vector<4x128xf32>
    %79 = arith.mulf %78, %59 : vector<4x128xf32>
    %cst_31 = arith.constant -0.333331019 : f32
    %80 = vector.broadcast %cst_31 : f32 to vector<4x128xf32>
    %81 = arith.addf %79, %80 : vector<4x128xf32>
    %82 = arith.mulf %58, %59 : vector<4x128xf32>
    %83 = arith.mulf %82, %81 : vector<4x128xf32>
    %84 = arith.addf %58, %83 : vector<4x128xf32>
    %85 = arith.cmpf ogt, %51, %52 : vector<4x128xf32>
    %cst_32 = arith.constant 1.57079637 : f32
    %86 = vector.broadcast %cst_32 : f32 to vector<4x128xf32>
    %87 = arith.subf %86, %84 : vector<4x128xf32>
    %88 = arith.select %85, %87, %84 : vector<4x128xi1>, vector<4x128xf32>
    %cst_33 = arith.constant 0.000000e+00 : f32
    %89 = vector.broadcast %cst_33 : f32 to vector<4x128xf32>
    %90 = arith.cmpf olt, %50, %89 : vector<4x128xf32>
    %cst_34 = arith.constant 3.14159274 : f32
    %91 = vector.broadcast %cst_34 : f32 to vector<4x128xf32>
    %92 = arith.subf %91, %88 : vector<4x128xf32>
    %93 = arith.select %90, %92, %88 : vector<4x128xi1>, vector<4x128xf32>
    %94 = arith.mulf %93, %93 : vector<4x128xf32>
    %c0_35 = arith.constant 0 : index
    %c0_36 = arith.constant 0 : index
    %95 = vector.load %arg9[%c0_35, %c0_36] : memref<1x1xf32, #tpu.memory_space<vmem>>, vector<1x1xf32>
    %cst_37 = arith.constant 0.000000e+00 : f32
    %96 = vector.broadcast %cst_37 : f32 to vector<4x128xf32>
    %97 = arith.select %44, %94, %96 : vector<4x128xi1>, vector<4x128xf32>
    %cst_38 = arith.constant dense<0.000000e+00> : vector<4xf32>
    %98 = vector.multi_reduction <add>, %97, %cst_38 [1] : vector<4x128xf32> to vector<4xf32>
    %99 = vector.shape_cast %98 : vector<4xf32> to vector<4x1xf32>
    %cst_39 = arith.constant dense<0.000000e+00> : vector<1xf32>
    %100 = vector.multi_reduction <add>, %99, %cst_39 [0] : vector<4x1xf32> to vector<1xf32>
    %101 = vector.shape_cast %100 : vector<1xf32> to vector<1x1xf32>
    %102 = arith.addf %95, %101 : vector<1x1xf32>
    %c0_40 = arith.constant 0 : index
    %c0_41 = arith.constant 0 : index
    %103 = vector.load %arg9[%c0_40, %c0_41] : memref<1x1xf32, #tpu.memory_space<vmem>>, vector<1x1xf32>
    tpu.vector_store %arg9[%c0_40, %c0_41], %102 {strides = array<i32>} : memref<1x1xf32, #tpu.memory_space<vmem>>, vector<1x1xf32>,
    %c0_42 = arith.constant 0 : index
    %c0_43 = arith.constant 0 : index
    %104 = vector.load %arg10[%c0_42, %c0_43] : memref<1x1xf32, #tpu.memory_space<vmem>>, vector<1x1xf32>
    %105 = arith.extui %44 : vector<4x128xi1> to vector<4x128xi32>
    %106 = arith.sitofp %105 : vector<4x128xi32> to vector<4x128xf32>
    %cst_44 = arith.constant dense<0.000000e+00> : vector<4xf32>
    %107 = vector.multi_reduction <add>, %106, %cst_44 [1] : vector<4x128xf32> to vector<4xf32>
    %108 = vector.shape_cast %107 : vector<4xf32> to vector<4x1xf32>
    %cst_45 = arith.constant dense<0.000000e+00> : vector<1xf32>
    %109 = vector.multi_reduction <add>, %108, %cst_45 [0] : vector<4x1xf32> to vector<1xf32>
    %110 = vector.shape_cast %109 : vector<1xf32> to vector<1x1xf32>
    %111 = arith.addf %104, %110 : vector<1x1xf32>
    %c0_46 = arith.constant 0 : index
    %c0_47 = arith.constant 0 : index
    %112 = vector.load %arg10[%c0_46, %c0_47] : memref<1x1xf32, #tpu.memory_space<vmem>>, vector<1x1xf32>
    tpu.vector_store %arg10[%c0_46, %c0_47], %111 {strides = array<i32>} : memref<1x1xf32, #tpu.memory_space<vmem>>, vector<1x1xf32>,
    %c0_i32_48 = arith.constant 0 : i32
    %113 = arith.cmpi eq, %arg0, %c0_i32_48 : i32
    %114 = arith.extui %113 : i1 to i32
    %c0_i32_49 = arith.constant 0 : i32
    %115 = arith.cmpi ne, %114, %c0_i32_49 : i32
    scf.if %115 {
      %c0_50 = arith.constant 0 : index
      %c0_51 = arith.constant 0 : index
      %116 = vector.load %arg7[%c0_50, %c0_51] : memref<1x1xf32, #tpu.memory_space<vmem>>, vector<1x1xf32>
      %cst_52 = arith.constant 9.765625E-4 : f32
      %117 = vector.broadcast %cst_52 : f32 to vector<1x1xf32>
      %118 = arith.mulf %116, %117 : vector<1x1xf32>
      %c0_53 = arith.constant 0 : index
      %c0_54 = arith.constant 0 : index
      %119 = vector.load %arg8[%c0_53, %c0_54] : memref<1x1xf32, #tpu.memory_space<vmem>>, vector<1x1xf32>
      %cst_55 = arith.constant 0.001953125 : f32
      %120 = vector.broadcast %cst_55 : f32 to vector<1x1xf32>
      %121 = arith.mulf %119, %120 : vector<1x1xf32>
      %c0_56 = arith.constant 0 : index
      %c0_57 = arith.constant 0 : index
      %122 = vector.load %arg10[%c0_56, %c0_57] : memref<1x1xf32, #tpu.memory_space<vmem>>, vector<1x1xf32>
      %cst_58 = arith.constant 0.000000e+00 : f32
      %123 = vector.broadcast %cst_58 : f32 to vector<1x1xf32>
      %124 = arith.cmpf ogt, %122, %123 : vector<1x1xf32>
      %c0_59 = arith.constant 0 : index
      %c0_60 = arith.constant 0 : index
      %125 = vector.load %arg9[%c0_59, %c0_60] : memref<1x1xf32, #tpu.memory_space<vmem>>, vector<1x1xf32>
      %cst_61 = arith.constant 1.000000e+00 : f32
      %126 = vector.broadcast %cst_61 : f32 to vector<1x1xf32>
      %127 = arith.maximumf %122, %126 : vector<1x1xf32>
      %128 = arith.divf %125, %127 : vector<1x1xf32>
      %cst_62 = arith.constant 0.000000e+00 : f32
      %129 = vector.broadcast %cst_62 : f32 to vector<1x1xf32>
      %130 = arith.select %124, %128, %129 : vector<1x1xi1>, vector<1x1xf32>
      %cst_63 = arith.constant 0.699999988 : f32
      %131 = vector.broadcast %cst_63 : f32 to vector<1x1xf32>
      %132 = arith.mulf %131, %118 : vector<1x1xf32>
      %cst_64 = arith.constant 1.000000e+00 : f32
      %133 = vector.broadcast %cst_64 : f32 to vector<1x1xf32>
      %134 = arith.mulf %133, %121 : vector<1x1xf32>
      %135 = arith.addf %132, %134 : vector<1x1xf32>
      %cst_65 = arith.constant 1.300000e+00 : f32
      %136 = vector.broadcast %cst_65 : f32 to vector<1x1xf32>
      %137 = arith.mulf %136, %130 : vector<1x1xf32>
      %138 = arith.addf %135, %137 : vector<1x1xf32>
      %c0_66 = arith.constant 0 : index
      %c0_67 = arith.constant 0 : index
      %139 = vector.load %arg6[%c0_66, %c0_67] : memref<1x1xf32, #tpu.memory_space<vmem>>, vector<1x1xf32>
      tpu.vector_store %arg6[%c0_66, %c0_67], %138 {strides = array<i32>} : memref<1x1xf32, #tpu.memory_space<vmem>>, vector<1x1xf32>,
    } else {
    }
    return
  }
  func.func @transform_0(%arg0: i32) -> (i32, i32) {
    %c0_i32 = arith.constant 0 : i32
    %c0_i32_0 = arith.constant 0 : i32
    return %arg0, %c0_i32 : i32, i32
  }
  func.func @transform_1(%arg0: i32) -> (i32, i32) {
    %c0_i32 = arith.constant 0 : i32
    %c0_i32_0 = arith.constant 0 : i32
    return %arg0, %c0_i32 : i32, i32
  }
  func.func @transform_2(%arg0: i32) -> (i32, i32) {
    %c0_i32 = arith.constant 0 : i32
    %c0_i32_0 = arith.constant 0 : i32
    return %arg0, %c0_i32 : i32, i32
  }
  func.func @transform_3(%arg0: i32) -> (i32, i32) {
    %c0_i32 = arith.constant 0 : i32
    %c0_i32_0 = arith.constant 0 : i32
    return %arg0, %c0_i32 : i32, i32
  }
  func.func @transform_4(%arg0: i32) -> (i32, i32) {
    %c0_i32 = arith.constant 0 : i32
    %c0_i32_0 = arith.constant 0 : i32
    %c0_i32_1 = arith.constant 0 : i32
    return %c0_i32, %c0_i32_0 : i32, i32
  }
  func.func @transform_5(%arg0: i32) -> (i32, i32) {
    %c0_i32 = arith.constant 0 : i32
    %c0_i32_0 = arith.constant 0 : i32
    %c0_i32_1 = arith.constant 0 : i32
    return %c0_i32, %c0_i32_0 : i32, i32
  }
}

</mosaic_0001>

<bundles_post_ra>
// kernel: tpu_custom_call.1
= control target key start
LH: loop header
LB: loop body
LE: loop exit
PB: predicated region body
PF: predicated region fallthrough
CT: control target
= control target key end

     0   :  { %10 = vsyncpa [#allocation7], 0  ;;  %s420_s0 = inlined_call_operand.hbm [shape: f32[4,128], index: 0, kind: input, shape index: {}]   ;;  %s421_s1 = inlined_call_operand.hbm [shape: f32[4,128], index: 1, kind: input, shape index: {}]   ;;  %s422_s2 = inlined_call_operand.vmem [shape: f32[4,128], index: 2, kind: input, shape index: {}]   ;;  %s423_s3 = inlined_call_operand.vmem [shape: f32[4,128], index: 3, kind: input, shape index: {}]   ;;  %s424_s4 = inlined_call_operand.vmem [shape: f32[1,128], index: 4, kind: input, shape index: {}]   ;;  %s425_s5 = inlined_call_operand.hbm [shape: f32[1,1], index: 5, kind: output, shape index: {}]  }
   0x1   :  { %11 = vsyncpa [#allocation10], 0 }
   0x2   :  { %12 = vsyncpa [#allocation8], 0  ;;  %s314_s18 = smov [#allocation6]   ;;  %s315_s20 = smov [#allocation9]  }
   0x3   :  { %s19_s19 = sshll.u32 %s314_s18, 4  ;;  %s29_s21 = sshll.u32 %s315_s20, 4  ;;  %s20_s19 = int_to_ptr.vmem [resolvable:$true] %s19_s19  ;;  %s30_s21 = int_to_ptr.vmem [resolvable:$true] %s29_s21 }
   0x4   :  { %s242_s24 = scalar_lea.hbm %s420_s0, 64 }
   0x5   :  { %p243_p0 = scmp.ne.s32.totalorder %s420_s0, %s242_s24  ;;  %p246_p1 = scmp.lt.u32.totalorder %s242_s24, %s420_s0 }
   0x7   :  { %p248_p2 = pnand %p246_p1, %p243_p0 }
   0x9   :  { %251 = shalt.err (!%p248_p2)
}
   0xa   :  { %s252_s29 = scalar_lea.vmem %s20_s19, 64  ;;  %p257_p4 = scmp.lt.s32.totalorder %s20_s19, %s20_s19 }
   0xb   :  { %p253_p3 = scmp.ne.s32.totalorder %s20_s19, %s252_s29  ;;  %p258_p5 = scmp.lt.s32.totalorder %s252_s29, %s252_s29 }
   0xd   :  { %p259_p6 = por %p258_p5, %p257_p4 }
   0xf   :  { %p260_p7 = pnand %p259_p6, %p253_p3 }
  0x11   :  { %263 = shalt.err (!%p260_p7)
}
  0x12   :  { %22 = dma.hbm_to_vmem [thread:$0]  %s420_s0, 64, %s20_s19, [#allocation7]  }
  0x13   :  { %s264_s9 = scalar_lea.hbm %s421_s1, 64 }
  0x14   :  { %p265_p8 = scmp.ne.s32.totalorder %s421_s1, %s264_s9  ;;  %p268_p9 = scmp.lt.u32.totalorder %s264_s9, %s421_s1 }
  0x16   :  { %p270_p10 = pnand %p268_p9, %p265_p8 }
  0x18   :  { %273 = shalt.err (!%p270_p10)
}
  0x19   :  { %s274_s14 = scalar_lea.vmem %s30_s21, 64  ;;  %p279_p12 = scmp.lt.s32.totalorder %s30_s21, %s30_s21 }
  0x1a   :  { %p275_p11 = scmp.ne.s32.totalorder %s30_s21, %s274_s14  ;;  %p280_p13 = scmp.lt.s32.totalorder %s274_s14, %s274_s14 }
  0x1c   :  { %p281_p0 = por %p280_p13, %p279_p12 }
  0x1e   :  { %p282_p1 = pnand %p281_p0, %p275_p11 }
  0x20   :  { %285 = shalt.err (!%p282_p1)
}
  0x21   :  { %32 = dma.hbm_to_vmem [thread:$0]  %s421_s1, 64, %s30_s21, [#allocation10]  }
  0x22   :  { %308 = dma.done.wait [#allocation7], 64  }
  0x23   :  { %309 = vsyncadd [#allocation7], 4294967232 }
  0x24   :  { %310 = dma.done.wait [#allocation10], 64  }
  0x25   :  { %311 = vsyncadd [#allocation10], 4294967232  ;;  %v56_v0 = vld [vmem:[%s422_s2] sm:$0xf]  ;;  %v54_v2 = vld [vmem:[#allocation6] sm:$0xf] }
  0x26   :  { %v57_v1 = vld [vmem:[%s423_s3] sm:$0xf]  ;;  %v89_v3 = vmul.f32 %v56_v0, %v56_v0  ;;  %v55_v5 = vld [vmem:[#allocation9] sm:$0xf]  ;;  %v79_v6 = vmul.f32 %v54_v2, %v54_v2  ;;  %v129_v10 = vmul.f32 %v56_v0, %v54_v2  ;;  %vm65_vm2 = vcmask 1043456   ;;  %s317_s3 = smov [#allocation11]  }
  0x27   :  { %v90_v4 = vmul.f32 %v57_v1, %v57_v1  ;;  %v127_v7 = vmul.f32 %v57_v1, %v54_v2  ;;  %v80_v8 = vmul.f32 %v55_v5, %v55_v5  ;;  %v126_v9 = vmul.f32 %v56_v0, %v55_v5 }
  0x28   :  { %v130_v11 = vmul.f32 %v57_v1, %v55_v5  ;;  %v59_v31 = vsub.f32 %v54_v2, %v56_v0  ;;  %v60_v32 = vsub.f32 %v55_v5, %v57_v1  ;;  %vm49_vm4 = vcmask 0  }
  0x29   :  { %v91_v12 = vadd.f32 %v90_v4, %v89_v3  ;;  %v378_v13 = vadd.f32 %v80_v8, %v79_v6  ;;  %v128_v14 = vsub.f32 %v126_v9, %v127_v7  ;;  %v316_v40 = vmov 0.0   ;;  %v228_v3 = vld [vmem:[%s424_s4] ss:$0 sm:$0xff]  ;;  %s218_s4 = sshll.u32 %s317_s3, 4  ;;  %s219_s4 = int_to_ptr.vmem [resolvable:$true] %s218_s4 }
  0x2a   :  { %v131_v15 = vadd.f32 %v130_v11, %v129_v10  ;;  %v62_v34 = vmul.f32 %v59_v31, %v59_v31  ;;  %v63_v35 = vmul.f32 %v60_v32, %v60_v32  ;;  %50 = vst.msk [vmem:[#allocation2] sm:$0x1] %vm49_vm4, %v316_v40  ;;  %51 = vst.msk [vmem:[#allocation3] sm:$0x1] %vm49_vm4, %v316_v40  ;;  %s286_s20 = scalar_lea.vmem %s219_s4, 16  ;;  %s290_s21 = scalar_lea.vmem %s219_s4, 32 }
  0x2b   :  { %234 = vrsqrt.f32 %v91_v12  ;;  %v132_v16 = vand.u32 2147483647, %v128_v14  ;;  %vm94_vm0 = vcmp.eq.f32.partialorder %v91_v12, inf  ;;  %v97_v22 = vand.u32 2147483648, %v91_v12  ;;  %52 = vst.msk [vmem:[#allocation4] sm:$0x1] %vm49_vm4, %v316_v40  ;;  %p287_p2 = scmp.ne.s32.totalorder %s219_s4, %s286_s20  ;;  %p291_p3 = scmp.lt.s32.totalorder %s219_s4, %s219_s4 }
  0x2c   :  { %v133_v17 = vand.u32 2147483647, %v131_v15  ;;  %vm96_vm1 = vcmp.eq.f32.partialorder %v91_v12, 0.0  ;;  %v64_v37 = vadd.f32 %v63_v35, %v62_v34  ;;  %53 = vst.msk [vmem:[#allocation5] sm:$0x1] %vm49_vm4, %v316_v40  ;;  %vm160_vm5 = vcmp.lt.f32.partialorder %v131_v15, 0.0  ;;  %p292_p4 = scmp.lt.s32.totalorder %s290_s21, %s286_s20 }
  0x2d   :  { %vm84_vm6 = vcmp.eq.f32.partialorder %v378_v13, inf  ;;  %v87_v60 = vand.u32 2147483648, %v378_v13  ;;  %vm86_vm7 = vcmp.eq.f32.partialorder %v378_v13, 0.0 }
  0x2e   :  { %v134_v18 = vmin.f32 %v132_v16, %v133_v17  ;;  %v135_v19 = vmax.f32 %v132_v16, %v133_v17  ;;  %vm157_vm3 = vcmp.gt.f32.partialorder %v132_v16, %v133_v17  ;;  %v66_v39 = vsel %vm65_vm2, %v64_v37, 0.0  ;;  %p293_p5 = por %p292_p4, %p291_p3 }
  0x2f   :  { %67 = vadd.xlane.f32.xlu1 %v66_v39 }
  0x30   :  { %v136_v20 = vmax.f32 %v135_v19, 1e-30  ;;  %p294_p6 = pnand %p293_p5, %p287_p2 }
  0x32   :  { %236 = vrcp.f32 %v136_v20 }
  0x33   :  { %238 = vrsqrt.f32 %v378_v13 }
  0x35   :  { %v235_v21 = vpop.eup %234 }
  0x36   :  { %v93_v23 = vmul.f32 %v235_v21, %v91_v12 }
  0x38   :  { %v95_v24 = vsel %vm94_vm0, %v91_v12, %v93_v23 }
  0x39   :  { %v98_v25 = vsel %vm96_vm1, %v97_v22, %v95_v24 }
  0x3a   :  { %v121_v26 = vsel %vm65_vm2, %v98_v25, -inf }
  0x3b   :  { %122 = vmax.xlane.f32.xlu0 %v121_v26 }
  0x3c   :  { %v237_v27 = vpop.eup %236 }
  0x3d   :  { %v138_v28 = vmul.f32 %v237_v27, %v134_v18  ;;  %v239_v58 = vpop.eup %238  ;;  %v61_v18 = vld [vmem:[#allocation2] sm:$0x1] }
  0x3e   :  { %v83_v59 = vmul.f32 %v239_v58, %v378_v13 }
  0x3f   :  { %v139_v29 = vmul.f32 %v138_v28, %v138_v28 }
  0x40   :  { %v85_v61 = vsel %vm84_vm6, %v378_v13, %v83_v59 }
  0x41   :  { %v140_v30 = vmul.f32 0.002823639, %v139_v29  ;;  %v154_v50 = vmul.f32 %v139_v29, %v138_v28  ;;  %v88_v62 = vsel %vm86_vm7, %v87_v60, %v85_v61 }
  0x42   :  { %v99_v63 = vsub.f32 %v88_v62, %v98_v25 }
  0x43   :  { %v141_v33 = vadd.f32 -0.015956903, %v140_v30 }
  0x44   :  { %v101_v0 = vmul.f32 %v99_v63, %v99_v63 }
  0x45   :  { %v142_v36 = vmul.f32 %v141_v33, %v139_v29 }
  0x46   :  { %v108_v5 = vmul.f32 %v228_v3, %v101_v0 }
  0x47   :  { %v143_v38 = vadd.f32 0.04250499, %v142_v36 }
  0x48   :  { %v109_v10 = vsel %vm65_vm2, %v108_v5, 0.0 }
  0x49   :  { %v144_v41 = vmul.f32 %v143_v38, %v139_v29 }
  0x4b   :  { %v145_v42 = vadd.f32 -0.07489009, %v144_v41  ;;  %v164_v41 = vld [vmem:[#allocation4] sm:$0x1] }
  0x4d   :  { %v146_v43 = vmul.f32 %v145_v42, %v139_v29 }
  0x4f   :  { %v147_v44 = vadd.f32 0.10634793, %v146_v43 }
  0x51   :  { %v148_v45 = vmul.f32 %v147_v44, %v139_v29 }
  0x53   :  { %v149_v46 = vadd.f32 -0.14202736, %v148_v45 }
  0x55   :  { %v150_v47 = vmul.f32 %v149_v46, %v139_v29 }
  0x57   :  { %v151_v48 = vadd.f32 0.19992696, %v150_v47 }
  0x59   :  { %v152_v49 = vmul.f32 %v151_v48, %v139_v29  ;;  %v100_v48 = vld [vmem:[#allocation3] sm:$0x1] }
  0x5b   :  { %v153_v51 = vadd.f32 -0.33333102, %v152_v49 }
  0x5d   :  { %v155_v52 = vmul.f32 %v154_v50, %v153_v51 }
  0x5f   :  { %v156_v53 = vadd.f32 %v155_v52, %v138_v28 }
  0x61   :  { %v158_v54 = vsub.f32 1.5707964, %v156_v53 }
  0x63   :  { %v159_v55 = vsel %vm157_vm3, %v158_v54, %v156_v53 }
  0x64   :  { %v161_v56 = vsub.f32 3.1415927, %v159_v55 }
  0x66   :  { %v162_v57 = vsel %vm160_vm5, %v161_v56, %v159_v55 }
  0x67   :  { %v163_v2 = vmul.f32 %v162_v57, %v162_v57 }
  0xbc   :  { %v68_v11 = vpop.xlane.xlu1 %67 }
  0xbd   :  { %v69_v12 = vsel %vm65_vm2, %v68_v11, 0.0 }
  0xbe   :  { %v70_v13 = vrot.slane %v69_v12, 4 }
  0xc0   :  { %v71_v14 = vadd.f32 %v70_v13, %v69_v12 }
  0xc2   :  { %v72_v15 = vrot.slane %v71_v14, 2 }
  0xc4   :  { %v73_v16 = vadd.f32 %v72_v15, %v71_v14 }
  0xc6   :  { %v74_v17 = vrot.slane %v73_v16, 1 }
  0xc8   :  { %v123_v1 = vpop.xlane.xlu0 %122  ;;  %v75_v19 = vadd.f32 %v74_v17, %v73_v16 }
  0xc9   :  { %v124_v4 = vmul.f32 0.05, %v123_v1 }
  0xca   :  { %v76_v20 = vadd.f32 %v75_v19, %v61_v18 }
  0xcb   :  { %vm125_vm8 = vcmp.gt.f32.partialorder %v98_v25, %v124_v4 }
  0xcc   :  { %v229_v6 = vsel %vm125_vm8, 1.0, %v316_v40  ;;  %v165_v7 = vsel %vm125_vm8, %v163_v2, 0.0  ;;  %78 = vst.msk [vmem:[#allocation2] sm:$0x1] %vm49_vm4, %v76_v20  ;;  %v178_v40 = vld [vmem:[#allocation5] sm:$0x1] }
  0xcd   :  { %v181_v8 = vsel %vm65_vm2, %v229_v6, 0.0  ;;  %v166_v9 = vsel %vm65_vm2, %v165_v7, 0.0 }
  0xce   :  { %182 = vadd.xlane.f32.xlu0 %v181_v8  ;;  %167 = vadd.xlane.f32.xlu1 %v166_v9 }
  0xd2   :  { %110 = vadd.xlane.f32.xlu0 %v109_v10 }
  0xd3   :  { %v196_v53 = vld [vmem:[#allocation2] sm:$0x1] }
  0xd4   :  { %v197_v54 = vmul.f32 0.0009765625, %v196_v53 }
  0xd6   :  { %v207_v59 = vmul.f32 0.7, %v197_v54 }
 0x15b   :  { %v183_v21 = vpop.xlane.xlu0 %182  ;;  %v168_v22 = vpop.xlane.xlu1 %167 }
 0x15c   :  { %v184_v23 = vsel %vm65_vm2, %v183_v21, 0.0  ;;  %v169_v24 = vsel %vm65_vm2, %v168_v22, 0.0 }
 0x15d   :  { %v185_v25 = vrot.slane %v184_v23, 4  ;;  %v170_v26 = vrot.slane %v169_v24, 4 }
 0x15f   :  { %v186_v27 = vadd.f32 %v185_v25, %v184_v23  ;;  %v171_v28 = vadd.f32 %v170_v26, %v169_v24  ;;  %v111_v29 = vpop.xlane.xlu0 %110 }
 0x160   :  { %v112_v30 = vsel %vm65_vm2, %v111_v29, 0.0 }
 0x161   :  { %v187_v31 = vrot.slane %v186_v27, 2  ;;  %v172_v32 = vrot.slane %v171_v28, 2  ;;  %v113_v33 = vrot.slane %v112_v30, 4 }
 0x163   :  { %v188_v34 = vadd.f32 %v187_v31, %v186_v27  ;;  %v173_v35 = vadd.f32 %v172_v32, %v171_v28  ;;  %v114_v36 = vadd.f32 %v113_v33, %v112_v30 }
 0x165   :  { %v189_v37 = vrot.slane %v188_v34, 1  ;;  %v174_v38 = vrot.slane %v173_v35, 1  ;;  %v115_v39 = vrot.slane %v114_v36, 2 }
 0x167   :  { %v190_v42 = vadd.f32 %v189_v37, %v188_v34  ;;  %v175_v43 = vadd.f32 %v174_v38, %v173_v35  ;;  %v116_v44 = vadd.f32 %v115_v39, %v114_v36 }
 0x169   :  { %v191_v45 = vadd.f32 %v190_v42, %v178_v40  ;;  %v176_v46 = vadd.f32 %v175_v43, %v164_v41  ;;  %v117_v47 = vrot.slane %v116_v44, 1 }
 0x16b   :  { %192 = vst.msk [vmem:[#allocation5] sm:$0x1] %vm49_vm4, %v191_v45  ;;  %177 = vst.msk [vmem:[#allocation4] sm:$0x1] %vm49_vm4, %v176_v46  ;;  %v118_v49 = vadd.f32 %v117_v47, %v116_v44 }
 0x16d   :  { %v119_v50 = vadd.f32 %v118_v49, %v100_v48 }
 0x16f   :  { %120 = vst.msk [vmem:[#allocation3] sm:$0x1] %vm49_vm4, %v119_v50 }
 0x172   :  { %v200_v51 = vld [vmem:[#allocation5] sm:$0x1]  ;;  %v202_v58 = vld [vmem:[#allocation4] sm:$0x1] }
 0x173   :  { %v203_v52 = vmax.f32 %v200_v51, 1.0  ;;  %vm201_vm9 = vcmp.gt.f32.partialorder %v200_v51, 0.0 }
 0x175   :  { %240 = vrcp.f32 %v203_v52 }
 0x176   :  { %v198_v55 = vld [vmem:[#allocation3] sm:$0x1] }
 0x177   :  { %v199_v57 = vmul.f32 0.001953125, %v198_v55 }
 0x179   :  { %v208_v62 = vadd.f32 %v207_v59, %v199_v57 }
 0x17f   :  { %v241_v56 = vpop.eup %240 }
 0x180   :  { %v205_v60 = vmul.f32 %v241_v56, %v202_v58 }
 0x182   :  { %v206_v61 = vsel %vm201_vm9, %v205_v60, 0.0 }
 0x183   :  { %v209_v63 = vmul.f32 1.3, %v206_v61 }
 0x185   :  { %v210_v0 = vadd.f32 %v209_v63, %v208_v62 }
 0x187   :  { %211 = vst.msk [vmem:[#allocation11] sm:$0x1] %vm49_vm4, %v210_v0 }
 0x188   :  { %297 = shalt.err (!%p294_p6)
}
 0x189   :  { %s298_s24 = scalar_lea.hbm %s425_s5, 16 }
 0x18a   :  { %p299_p7 = scmp.ne.s32.totalorder %s425_s5, %s298_s24  ;;  %p302_p8 = scmp.lt.u32.totalorder %s298_s24, %s425_s5 }
 0x18c   :  { %p304_p9 = pnand %p302_p8, %p299_p7 }
 0x18e   :  { %307 = shalt.err (!%p304_p9)
}
 0x18f   :  { %221 = dma.vmem_to_hbm [thread:$0]  %s219_s4, 16, %s425_s5, [#allocation8]  }
 0x190   :  { %312 = dma.done.wait [#allocation8], 16  }
 0x191   :  { %313 = vsyncadd [#allocation8], 4294967280 }
 0x192   :  { %225 = vsyncpa [#allocation7], 1 }
 0x193   :  { %226 = vsyncpa [#allocation10], 1 }
 0x194   :  { %227 = vsyncpa [#allocation8], 1 }

</bundles_post_ra>
